<compile_context>
chip_gen: v7x
topology: tpu7x:2x2x1
jax: 0.10.0
libtpu: 0.0.40
codegen_flags: <defaults>
</compile_context>

<pallas_src>
import functools

import jax
import jax.numpy as jnp
from jax.experimental import pallas as pl
from jax.experimental.pallas import tpu as pltpu

BN_EPS = 1e-5


def _linear_bn_relu_kernel(x_ref, wt_ref, gamma_ref, beta_ref, o_ref):
    # x: (N, C_in) whole array (single VMEM copy)
    # wt: (C_in, TN)   gamma/beta: (1, TN)   o: (N, TN)
    z = jnp.dot(x_ref[...], wt_ref[...], preferred_element_type=jnp.float32)

    # BatchNorm1d training-mode batch statistics, per feature (per column).
    # E[z^2] - E[z]^2: one elementwise z*z pass feeds both moments, saving a
    # full (N, TN) subtraction pass vs E[(z-mean)^2].  Clamp for safety.
    inv_n = 1.0 / x_ref.shape[0]
    mean = jnp.sum(z, axis=0, keepdims=True) * inv_n            # (1, TN)
    mean_sq = jnp.sum(z * z, axis=0, keepdims=True) * inv_n     # (1, TN)
    var = jnp.maximum(mean_sq - mean * mean, 0.0)               # (1, TN)

    # Fold gamma / beta / mean / rsqrt into one per-feature scale + shift.
    # rsqrt rides the EUP slot.
    scale = gamma_ref[...] * jax.lax.rsqrt(var + BN_EPS)        # (1, TN)
    shift = beta_ref[...] - mean * scale                        # (1, TN)

    # Fused affine + ReLU: 2 VALU passes over the (N, TN) tile.
    o_ref[...] = jnp.maximum(z * scale + shift, 0.0).astype(o_ref.dtype)


def prepare_params(weight, gamma, beta, *, tile_n=256, use_bf16=True):
    """One-time parameter prep (transpose / pad / cast). Reuse across calls."""
    c_out = weight.shape[0]
    c_out_p = pl.cdiv(c_out, tile_n) * tile_n
    pad = c_out_p - c_out
    wt = weight.T                                               # (C_in, C_out)
    if pad:
        wt = jnp.pad(wt, ((0, 0), (0, pad)))
        gamma = jnp.pad(gamma, (0, pad))
        beta = jnp.pad(beta, (0, pad))
    wt = wt.astype(jnp.bfloat16 if use_bf16 else jnp.float32)
    gamma2 = gamma.reshape(1, c_out_p).astype(jnp.float32)
    beta2 = beta.reshape(1, c_out_p).astype(jnp.float32)
    return wt, gamma2, beta2


def linear_block_prepared(x, wt, gamma2, beta2, c_out, *, tile_n=256,
                          use_bf16=True):
    n, c_in = x.shape
    c_out_p = wt.shape[1]
    x = x.astype(jnp.bfloat16 if use_bf16 else jnp.float32)
    in_bytes = jnp.dtype(x.dtype).itemsize

    # VMEM budget: x (single copy) + 2x weight tile + gamma/beta tiles
    # + 2x output tile + f32 z / epilogue slack; 1.5x headroom.
    vmem_need = int(1.5 * (
        n * c_in * in_bytes              # x, single-buffered whole array
        + 2 * c_in * tile_n * in_bytes   # W^T tile, double buffered
        + 4 * tile_n * 4                 # gamma/beta tiles
        + 2 * n * tile_n * 4             # output tile, double buffered
        + 2 * n * tile_n * 4))           # z + epilogue temporaries
    vmem_limit = min(96 * 1024 * 1024, max(32 * 1024 * 1024, vmem_need))
    # TODO(synk): if vmem_limit approaches the 64 MiB v7x ceiling (large N),
    # use the two-phase sum/sum-sq design described at the top of the file.

    cost = pl.CostEstimate(
        flops=2 * n * c_in * c_out_p,
        transcendentals=c_out_p,
        bytes_accessed=(n * c_in * in_bytes + c_in * c_out_p * in_bytes
                        + 2 * c_out_p * 4 + n * c_out_p * 4))

    out = pl.pallas_call(
        _linear_bn_relu_kernel,
        out_shape=jax.ShapeDtypeStruct((n, c_out_p), jnp.float32),
        grid=(c_out_p // tile_n,),
        in_specs=[
            # x is constant across the grid: whole array resident in VMEM
            # once (no per-step DMA, no double buffering of the largest slab).
            pl.BlockSpec(memory_space=pltpu.MemorySpace.VMEM),
            pl.BlockSpec((c_in, tile_n), lambda j: (0, j)),     # W^T tile
            pl.BlockSpec((1, tile_n), lambda j: (0, j)),        # gamma tile
            pl.BlockSpec((1, tile_n), lambda j: (0, j)),        # beta tile
        ],
        out_specs=pl.BlockSpec((n, tile_n), lambda j: (0, j)),
        compiler_params=pltpu.CompilerParams(
            dimension_semantics=("parallel",),                  # megacore
            vmem_limit_bytes=vmem_limit),
        cost_estimate=cost,
    )(x, wt, gamma2, beta2)

    return out[:, :c_out] if c_out_p != c_out else out


@functools.partial(jax.jit, static_argnames=("tile_n", "use_bf16"))
def linear_block(x, weight, bias, gamma, beta, *, tile_n=256, use_bf16=True):
    """Linear(+bias) -> BatchNorm1d (training-mode batch stats) -> ReLU.

    x: (N, C_in) f32. weight: (C_out, C_in). bias/gamma/beta: (C_out,).
    Returns (N, C_out) f32.
    """
    # The Linear bias is exactly cancelled by BN's batch-mean subtraction in
    # training mode, so it has no effect on the returned activations.
    del bias
    c_out = weight.shape[0]
    wt, gamma2, beta2 = prepare_params(
        weight, gamma, beta, tile_n=tile_n, use_bf16=use_bf16)
    return linear_block_prepared(
        x, wt, gamma2, beta2, c_out, tile_n=tile_n, use_bf16=use_bf16)


def _reference(x, weight, bias, gamma, beta):
    y = x @ weight.T + bias
    mean = jnp.mean(y, axis=0, keepdims=True)
    var = jnp.mean((y - mean) ** 2, axis=0, keepdims=True)
    xhat = (y - mean) / jnp.sqrt(var + BN_EPS)
    return jnp.maximum(gamma * xhat + beta, 0.0)


if __name__ == "__main__":
    key = jax.random.PRNGKey(0)
    k_x, k_w, k_b, k_g, k_bt = jax.random.split(key, 5)

    # Small shapes; out_features=384 exercises both the padding path
    # (384 -> 512 with tile_n=256) and a multi-tile grid (2 tiles of 256).
    batch, in_features, out_features = 8, 32, 384

    x = jax.random.normal(k_x, (batch, in_features), dtype=jnp.float32)
    bound = 1.0 / (in_features ** 0.5)
    weight = jax.random.uniform(
        k_w, (out_features, in_features), minval=-bound, maxval=bound,
        dtype=jnp.float32)
    bias = jax.random.uniform(
        k_b, (out_features,), minval=-bound, maxval=bound, dtype=jnp.float32)
    gamma = 1.0 + 0.01 * jax.random.normal(k_g, (out_features,),
                                           dtype=jnp.float32)
    beta = 0.01 * jax.random.normal(k_bt, (out_features,), dtype=jnp.float32)

    ref = _reference(x, weight, bias, gamma, beta)

    # Default path: bf16 MXU operands, f32 stats/epilogue (loose tolerance —
    # the batch statistics are computed from a bf16 matmul, so small drift
    # from the f32 reference is expected).
    out = jax.block_until_ready(linear_block(x, weight, bias, gamma, beta))
    assert out.shape == (batch, out_features)
    assert jnp.allclose(out, ref, atol=5e-2, rtol=5e-2), "bf16 path mismatch"

    # f32 MXU path: tight check against the reference.
    out_f32 = jax.block_until_ready(
        linear_block(x, weight, bias, gamma, beta, use_bf16=False))
    assert jnp.allclose(out_f32, ref, atol=1e-4, rtol=1e-4), "f32 path mismatch"

    print("KERNEL_OK")
</pallas_src>

<mosaic_0001>
module attributes {stable_mosaic.version = 11 : i64} {
  func.func @_linear_bn_relu_kernel(%arg0: i32, %arg1: memref<8x32xbf16, #tpu.memory_space<vmem>>, %arg2: memref<32x256xbf16, #tpu.memory_space<vmem>>, %arg3: memref<1x256xf32, #tpu.memory_space<vmem>>, %arg4: memref<1x256xf32, #tpu.memory_space<vmem>>, %arg5: memref<8x256xf32, #tpu.memory_space<vmem>>) attributes {dimension_semantics = [#tpu.dimension_semantics<parallel>], iteration_bounds = array<i64: 2>, scalar_prefetch = 0 : i64, scratch_operands = 0 : i64, tpu.core_type = #tpu.core_type<tc>, window_params = [{pipeline_mode = #tpu.pipeline_mode<synchronous>, transform_indices = @transform_0, window_bounds = array<i64: 8, 32>}, {transform_indices = @transform_1, window_bounds = array<i64: 32, 256>}, {transform_indices = @transform_2, window_bounds = array<i64: 1, 256>}, {transform_indices = @transform_3, window_bounds = array<i64: 1, 256>}, {transform_indices = @transform_4, window_bounds = array<i64: 8, 256>}]} {
    %c0 = arith.constant 0 : index
    %c0_0 = arith.constant 0 : index
    %0 = vector.load %arg1[%c0, %c0_0] : memref<8x32xbf16, #tpu.memory_space<vmem>>, vector<8x32xbf16>
    %c0_1 = arith.constant 0 : index
    %c0_2 = arith.constant 0 : index
    %1 = vector.load %arg2[%c0_1, %c0_2] : memref<32x256xbf16, #tpu.memory_space<vmem>>, vector<32x256xbf16>
    %cst = arith.constant dense<0.000000e+00> : vector<8x256xf32>
    %2 = tpu.matmul %0, %1, %cst {dimension_numbers = #tpu.dot_dimension_numbers<[1], [0], [0], [1], [0, 0, 1, 1], [], []>} : vector<8x32xbf16>, vector<32x256xbf16>, vector<8x256xf32> -> vector<8x256xf32>
    %cst_3 = arith.constant dense<0.000000e+00> : vector<256xf32>
    %3 = vector.multi_reduction <add>, %2, %cst_3 [0] : vector<8x256xf32> to vector<256xf32>
    %4 = vector.shape_cast %3 : vector<256xf32> to vector<1x256xf32>
    %cst_4 = arith.constant 1.250000e-01 : f32
    %5 = vector.broadcast %cst_4 : f32 to vector<1x256xf32>
    %6 = arith.mulf %4, %5 : vector<1x256xf32>
    %7 = arith.mulf %2, %2 : vector<8x256xf32>
    %cst_5 = arith.constant dense<0.000000e+00> : vector<256xf32>
    %8 = vector.multi_reduction <add>, %7, %cst_5 [0] : vector<8x256xf32> to vector<256xf32>
    %9 = vector.shape_cast %8 : vector<256xf32> to vector<1x256xf32>
    %cst_6 = arith.constant 1.250000e-01 : f32
    %10 = vector.broadcast %cst_6 : f32 to vector<1x256xf32>
    %11 = arith.mulf %9, %10 : vector<1x256xf32>
    %12 = arith.mulf %6, %6 : vector<1x256xf32>
    %13 = arith.subf %11, %12 : vector<1x256xf32>
    %cst_7 = arith.constant 0.000000e+00 : f32
    %14 = vector.broadcast %cst_7 : f32 to vector<1x256xf32>
    %15 = arith.maximumf %13, %14 : vector<1x256xf32>
    %c0_8 = arith.constant 0 : index
    %c0_9 = arith.constant 0 : index
    %16 = vector.load %arg3[%c0_8, %c0_9] : memref<1x256xf32, #tpu.memory_space<vmem>>, vector<1x256xf32>
    %cst_10 = arith.constant 9.99999974E-6 : f32
    %17 = vector.broadcast %cst_10 : f32 to vector<1x256xf32>
    %18 = arith.addf %15, %17 : vector<1x256xf32>
    %19 = math.rsqrt %18 : vector<1x256xf32>
    %20 = arith.mulf %16, %19 : vector<1x256xf32>
    %c0_11 = arith.constant 0 : index
    %c0_12 = arith.constant 0 : index
    %21 = vector.load %arg4[%c0_11, %c0_12] : memref<1x256xf32, #tpu.memory_space<vmem>>, vector<1x256xf32>
    %22 = arith.mulf %6, %20 : vector<1x256xf32>
    %23 = arith.subf %21, %22 : vector<1x256xf32>
    %24 = vector.broadcast %20 : vector<1x256xf32> to vector<8x256xf32>
    %25 = arith.mulf %2, %24 : vector<8x256xf32>
    %26 = vector.broadcast %23 : vector<1x256xf32> to vector<8x256xf32>
    %27 = arith.addf %25, %26 : vector<8x256xf32>
    %cst_13 = arith.constant 0.000000e+00 : f32
    %28 = vector.broadcast %cst_13 : f32 to vector<8x256xf32>
    %29 = arith.maximumf %27, %28 : vector<8x256xf32>
    %c0_14 = arith.constant 0 : index
    %c0_15 = arith.constant 0 : index
    %30 = vector.load %arg5[%c0_14, %c0_15] : memref<8x256xf32, #tpu.memory_space<vmem>>, vector<8x256xf32>
    tpu.vector_store %arg5[%c0_14, %c0_15], %29 {strides = array<i32>} : memref<8x256xf32, #tpu.memory_space<vmem>>, vector<8x256xf32>,
    return
  }
  func.func @transform_0(%arg0: i32) -> (i32, i32) {
    %c0_i32 = arith.constant 0 : i32
    %c0_i32_0 = arith.constant 0 : i32
    %c0_i32_1 = arith.constant 0 : i32
    return %c0_i32, %c0_i32_0 : i32, i32
  }
  func.func @transform_1(%arg0: i32) -> (i32, i32) {
    %c0_i32 = arith.constant 0 : i32
    %c0_i32_0 = arith.constant 0 : i32
    return %c0_i32, %arg0 : i32, i32
  }
  func.func @transform_2(%arg0: i32) -> (i32, i32) {
    %c0_i32 = arith.constant 0 : i32
    %c0_i32_0 = arith.constant 0 : i32
    return %c0_i32, %arg0 : i32, i32
  }
  func.func @transform_3(%arg0: i32) -> (i32, i32) {
    %c0_i32 = arith.constant 0 : i32
    %c0_i32_0 = arith.constant 0 : i32
    return %c0_i32, %arg0 : i32, i32
  }
  func.func @transform_4(%arg0: i32) -> (i32, i32) {
    %c0_i32 = arith.constant 0 : i32
    %c0_i32_0 = arith.constant 0 : i32
    return %c0_i32, %arg0 : i32, i32
  }
}

</mosaic_0001>

<bundles_post_ra>
// kernel: linear_block.1
= control target key start
LH: loop header
LB: loop body
LE: loop exit
PB: predicated region body
PF: predicated region fallthrough
CT: control target
= control target key end

     0   :  { %s656_s15 = smov 0   ;;  %s658_s16 = smov 0   ;;  %s736_s0 = inlined_call_operand.vmem [shape: bf16[8,32], index: 0, kind: input, shape index: {}]   ;;  %s737_s1 = inlined_call_operand.vmem [shape: bf16[32,512], index: 1, kind: input, shape index: {}]   ;;  %s738_s2 = inlined_call_operand.vmem [shape: f32[1,512], index: 2, kind: input, shape index: {}]   ;;  %s739_s3 = inlined_call_operand.vmem [shape: f32[1,512], index: 3, kind: input, shape index: {}]   ;;  %s740_s4 = inlined_call_operand.vmem [shape: f32[8,512], index: 4, kind: output, shape index: {}]  }
   0x1   :  { %s660_s17 = smov 0  }
   0x2 LB: > { %s548_s18 = sadd.s32 4294967295, %s627_s17   ;;  %s673_s19 = sadd.s32 1, %s627_s17   ;;  %s627_s17 = sphi %s660_s17, %s743_s17   ;;  %s623_s16 = sphi %s658_s16, %s742_s16   ;;  %s619_s15 = sphi %s656_s15, %s741_s15  }
   0x3   : > { %s39_s20 = ssub.s32 %s627_s17, %s673_s19  ;;  %s42_s21 = sadd.s32 1, %s623_s16 }
   0x4   : > { %p40_p0 = scmp.eq.s32.totalorder %s39_s20, 0  ;;  %p49_p1 = scmp.ne.s32.totalorder %s623_s16, %s619_s15 }
   0x5   : > { %p50_p2 = scmp.eq.s32.totalorder %s627_s17, 0  ;;  %p551_p4 = scmp.ge.s32.totalorder %s627_s17, 2 }
   0x6   : > { %s682_s22 = scalar_select %p40_p0, %s623_s16, %s42_s21  }
   0x7   : > { %p51_p3 = por %p50_p2, %p49_p1  ;;  %156 = sbr.rel (%p551_p4) target bundleno = 21 (0x15), region = 20 }
   0xe   : > { %159 = sbr.rel (!%p51_p3) target bundleno = 21 (0x15), region = 24  ;;  %s161_s23 = sand.u32 (%p51_p3), 1, %s623_s16  }
   0xf   : > { %s568_s24 = sshll.u32 (%p51_p3), %s627_s17, 3  ;;  %s552_s25 = sshll.u32 (%p51_p3), %s161_s23, 5 }
  0x10   : > { %s166_s28 = scalar_lea.vmem (%p51_p3), %s737_s1, %s568_s24  ;;  %s163_s29 = scalar_lea.vmem (%p51_p3), [#allocation2], %s552_s25 }
  0x11   : > { %v200_v0 = vld [vmem:[%s166_s28] sm:$0xff] (%p51_p3)  ;;  %v202_v1 = vld [vmem:[%s166_s28 + $0x10] sm:$0xff] (%p51_p3) }
  0x12   : > { %v204_v2 = vld [vmem:[%s166_s28 + $0x20] sm:$0xff] (%p51_p3)  ;;  %201 = vst [vmem:[%s163_s29] sm:$0xff] (%p51_p3), %v200_v0  ;;  %203 = vst [vmem:[%s163_s29 + $0x8] sm:$0xff] (%p51_p3), %v202_v1  ;;  %v206_v3 = vld [vmem:[%s166_s28 + $0x30] sm:$0xff] (%p51_p3) }
  0x13   : > { %205 = vst [vmem:[%s163_s29 + $0x10] sm:$0xff] (%p51_p3), %v204_v2  ;;  %207 = vst [vmem:[%s163_s29 + $0x18] sm:$0xff] (%p51_p3), %v206_v3 }
  0x15 PF: > { %p555_p5 = scmp.ge.s32.totalorder %s627_s17, 1  ;;  %p228_p6 = scmp.lt.s32.totalorder %s627_s17, 3 }
  0x17   : > { %p229_p7 = pnand %p555_p5, %p228_p6 }
  0x18   : > { %s235_s30 = sand.u32 (!%p229_p7), 1, %s619_s15   ;;  %v629_v4 = vmov (!%p229_p7), 0   ;;  %v286_v9 = vld [vmem:[%s736_s0] sm:$0xf] (!%p229_p7)  ;;  %vm311_vm0 = vcmask (!%p229_p7), 261120   ;;  %s557_s9 = sshll.u32 (!%p229_p7), %s548_s18, 1  ;;  %v403_v54 = vlaneseq (!%p229_p7) }
  0x19   : > { %232 = sbr.rel (%p229_p7) target bundleno = 309 (0x135), region = 70  ;;  %s556_s5 = sshll.u32 (!%p229_p7), %s235_s30, 5  ;;  %347 = vmatprep.mubr.bf16.mxu0 (!%p229_p7), %v629_v4  ;;  %v630_v52 = vmov (!%p229_p7), 1966171168  }
  0x1a   : > { %s237_s6 = scalar_lea.vmem (!%p229_p7), [#allocation2], %s556_s5  ;;  %v401_v53 = vunpack.c.l.s4 (!%p229_p7), %v630_v52  ;;  %p270_p8 = scmp.lt.s32.totalorder (!%p229_p7), %s557_s9, 3  ;;  %v404_v56 = vshrl.u32 (!%p229_p7), %v403_v54, 7 }
  0x1b   : > { %v595_v5 = vld [vmem:[%s237_s6 + $0x4] ss:$8 sps:$4 sm:$0xff] (!%p229_p7)   ;;  %v597_v6 = vld [vmem:[%s237_s6] ss:$8 sps:$4 sm:$0xff] (!%p229_p7)   ;;  %v598_v7 = vld [vmem:[%s237_s6 + $0x14] ss:$8 sps:$4 sm:$0xff] (!%p229_p7)  }
  0x1c   : > { %315 = vmatprep.subr.bf16.mxu0 (!%p229_p7), %v595_v5  ;;  %v600_v8 = vld [vmem:[%s237_s6 + $0x10] ss:$8 sps:$4 sm:$0xff] (!%p229_p7)   ;;  %v402_v55 = vunpack.c.0.s8 (!%p229_p7), %v401_v53  ;;  %v420_v0 = vsub.s32 (!%p229_p7), 0, %v404_v56  ;;  %v424_v1 = vsub.s32 (!%p229_p7), 1, %v404_v56 }
  0x1d   : > { %316 = vmatpush1.bf16.msra.mxu0 (!%p229_p7), %v597_v6 }
  0x1e   : > { %317 = vmatprep.subr.bf16.mxu0 (!%p229_p7), %v598_v7  ;;  %v405_v58 = vsub.s32 (!%p229_p7), %v402_v55, %v404_v56 }
  0x20   : > { %s745_s9 = smov (!%p270_p8, %s557_s9), 3 }
  0x21   : > { %318 = vmatpush1.bf16.msra.mxu0 %v600_v8  ;;  %s272_s12 = scalar_lea.vmem %s738_s2, %s745_s9  ;;  %s277_s15 = scalar_lea.vmem %s739_s3, %s745_s9 }
  0x22   : > { %v392_v62 = vld [vmem:[%s272_s12] sm:$0x3]  ;;  %s560_s17 = sshll.u32 %s745_s9, 3 }
  0x23   : > { %s283_s21 = scalar_lea.vmem %s740_s4, %s560_s17 }
  0x24   : > { %565 = vmatmul.mubr.msk.bf16.vlgmr.msra.gmra.mrb[0].mxu0 %vm311_vm0, %v286_v9 }
  0xf7   : > { %v696_v10 = vpop.f32.mrb[0].mxu0 }
  0xf8   : > { %v356_v11 = vrot.slane %v696_v10, 4  ;;  %v370_v12 = vmul.f32 %v696_v10, %v696_v10  ;;  %v701_v13 = vpop.f32.mrb[1].mxu0 }
  0xf9   : > { %v362_v14 = vrot.slane %v701_v13, 4  ;;  %v371_v15 = vmul.f32 %v701_v13, %v701_v13  ;;  %v353_v16 = vpop.f32.mrb[2].mxu0 }
  0xfa   : > { %v357_v17 = vadd.f32 %v356_v11, %v696_v10  ;;  %v372_v18 = vrot.slane %v370_v12, 4  ;;  %v354_v19 = vpop.f32.mrb[3].mxu0 }
  0xfb   : > { %v363_v20 = vadd.f32 %v362_v14, %v701_v13  ;;  %v378_v21 = vrot.slane %v371_v15, 4 }
  0xfc   : > { %v358_v22 = vrot.slane %v357_v17, 2  ;;  %v373_v23 = vadd.f32 %v372_v18, %v370_v12  ;;  %v416_v12 = vld [vmem:[%s277_s15] sm:$0x3] }
  0xfd   : > { %v364_v24 = vrot.slane %v363_v20, 2  ;;  %v379_v25 = vadd.f32 %v378_v21, %v371_v15 }
  0xfe   : > { %v359_v26 = vadd.f32 %v358_v22, %v357_v17  ;;  %v374_v27 = vrot.slane %v373_v23, 2 }
  0xff   : > { %v365_v28 = vadd.f32 %v364_v24, %v363_v20  ;;  %v380_v29 = vrot.slane %v379_v25, 2 }
 0x100   : > { %v360_v30 = vrot.slane %v359_v26, 1  ;;  %v375_v31 = vadd.f32 %v374_v27, %v373_v23 }
 0x101   : > { %v366_v32 = vrot.slane %v365_v28, 1  ;;  %v381_v33 = vadd.f32 %v380_v29, %v379_v25 }
 0x102   : > { %v361_v34 = vadd.f32 %v360_v30, %v359_v26  ;;  %v376_v35 = vrot.slane %v375_v31, 1 }
 0x103   : > { %v367_v36 = vadd.f32 %v366_v32, %v365_v28  ;;  %v382_v37 = vrot.slane %v381_v33, 1 }
 0x104   : > { %v368_v38 = vmul.f32 0.125, %v361_v34  ;;  %v377_v39 = vadd.f32 %v376_v35, %v375_v31 }
 0x105   : > { %v369_v40 = vmul.f32 0.125, %v367_v36  ;;  %v383_v41 = vadd.f32 %v382_v37, %v381_v33 }
 0x106   : > { %v384_v42 = vmul.f32 0.125, %v377_v39  ;;  %v386_v43 = vmul.f32 %v368_v38, %v368_v38 }
 0x107   : > { %v385_v44 = vmul.f32 0.125, %v383_v41  ;;  %v387_v45 = vmul.f32 %v369_v40, %v369_v40 }
 0x108   : > { %v388_v46 = vsub.f32 %v384_v42, %v386_v43 }
 0x109   : > { %v389_v47 = vsub.f32 %v385_v44, %v387_v45 }
 0x10a   : > { %v390_v48 = vmax.f32 %v388_v46, 0.0 }
 0x10b   : > { %v391_v49 = vmax.f32 %v389_v47, 0.0 }
 0x10c   : > { %v393_v50 = vadd.f32 1e-05, %v390_v48 }
 0x10d   : > { %v394_v51 = vadd.f32 1e-05, %v391_v49 }
 0x10e   : > { %601 = vrsqrt.f32 %v393_v50 }
 0x10f   : > { %603 = vrsqrt.f32 %v394_v51 }
 0x118   : > { %v602_v57 = vpop.eup %601 }
 0x119   : > { %v604_v59 = vpop.eup %603 }
 0x11a   : > { %v399_v60 = vcombine.low %v602_v57, %v604_v59 }
 0x11c   : > { %v406_v61 = vrot.slane %v399_v60, %v405_v58 }
 0x11e   : > { %v413_v63 = vrot.slane %v406_v61, %v405_v58 }
 0x120   : > { %v415_v2 = vmul.f32 %v413_v63, %v392_v62 }
 0x122   : > { %v421_v3 = vrot.slane %v415_v2, %v420_v0  ;;  %v425_v4 = vrot.slane %v415_v2, %v424_v1 }
 0x124   : > { %v428_v5 = vmul.f32 %v421_v3, %v368_v38  ;;  %v429_v6 = vmul.f32 %v425_v4, %v369_v40  ;;  %v449_v7 = vmul.f32 %v421_v3, %v696_v10  ;;  %v450_v8 = vmul.f32 %v425_v4, %v701_v13 }
 0x126   : > { %v432_v9 = vcombine.low %v428_v5, %v429_v6 }
 0x128   : > { %v439_v11 = vrot.slane %v432_v9, %v405_v58 }
 0x12a   : > { %v446_v14 = vrot.slane %v439_v11, %v405_v58 }
 0x12c   : > { %v448_v15 = vsub.f32 %v416_v12, %v446_v14 }
 0x12e   : > { %v455_v16 = vrot.slane %v448_v15, %v420_v0  ;;  %v459_v17 = vrot.slane %v448_v15, %v424_v1 }
 0x130   : > { %v462_v18 = vadd.f32 %v455_v16, %v449_v7  ;;  %v463_v19 = vadd.f32 %v459_v17, %v450_v8 }
 0x132   : > { %v464_v10 = vmax.f32 %v462_v18, 0.0  ;;  %v465_v13 = vmax.f32 %v463_v19, 0.0 }
 0x134   : > { %466 = vst [vmem:[%s283_s21] sm:$0xff] %v464_v10  ;;  %467 = vst [vmem:[%s283_s21 + $0x8] sm:$0xff] %v465_v13 }
 0x135 PF: > { %p11_p9 = scmp.ge.s32.totalorder %s673_s19, 4   ;;  %s741_s15 = smov %s623_s16 }
 0x136   : > { %s742_s16 = smov %s682_s22  ;;  %s743_s17 = smov %s673_s19 }
 0x137   :  { %13 = sbr.rel (!%p11_p9) target bundleno = 2 (0x2), region = 115 }

</bundles_post_ra>
